<compile_context>
chip_gen: v6e
topology: v6e:2x2x1
jax: 0.10.0
libtpu: 0.0.40
codegen_flags: <defaults>
</compile_context>

<pallas_src>
import math

import jax
import jax.numpy as jnp
from jax.experimental import pallas as pl
from jax.experimental.pallas import tpu as pltpu


def _tile_lanes(x, reps):
    """Tile a 2-D array `reps` times along the last (lane) axis.

    Log-doubling concatenation (all pieces are identical, so order is
    irrelevant).  Avoids in-kernel reshapes, which may require relayout.
    """
    reps = int(reps)
    if reps <= 1:
        return x
    out = None
    cur = x
    r = reps
    while r > 0:
        if r & 1:
            out = cur if out is None else jnp.concatenate([out, cur], axis=-1)
        r >>= 1
        if r:
            cur = jnp.concatenate([cur, cur], axis=-1)
    return out


def _choose_rows(h, row_bytes, budget_bytes):
    """Row-tile height: full h if it fits the budget, otherwise the largest
    multiple-of-8 divisor of h that fits (keeps blocks (8, .)-aligned and the
    manual DMA math exact -- no partial edge tiles).  Falls back to h."""
    if h * row_bytes <= budget_bytes:
        return h
    best = None
    for d in range(8, h, 8):
        if h % d == 0 and d * row_bytes <= budget_bytes:
            best = d
    return best if best is not None else h


def _make_pos_kernel(B, rows, w2f, lane_reps, n_inflight):
    """Kernel for grid = (num_row_tiles,); row-tile axis is "parallel".

    colpat_ref : (1, w2f)     col-embed contribution per output row
                              (row-feature slots zero-filled)
    rowband_ref: (rows, L)    row-embed contribution period
                              (col-feature slots zero-filled)
    out_ref    : (B, h, w2f)  raw HBM output (memory_space=pl.ANY)
    slab_ref   : (rows, w2f)  VMEM scratch: batch-invariant slab for this tile
    sem        : (n_inflight,) DMA semaphores for the batch fan-out ring
    """

    def kernel(colpat_ref, rowband_ref, out_ref, slab_ref, sem):
        r = pl.program_id(0)
        row_start = pl.multiple_of(r * rows, rows)

        # Build the batch-invariant slab once per row tile (lane-aligned
        # concat pieces + one broadcast add); every batch write below is a
        # pure slab -> HBM DMA.
        row_part = _tile_lanes(rowband_ref[...], lane_reps)      # (rows, w2f)
        slab_ref[...] = colpat_ref[...] + row_part                # (1,.)+(rows,.)

        def make_dma(b, slot):
            return pltpu.make_async_copy(
                slab_ref,
                out_ref.at[b, pl.ds(row_start, rows), :],
                sem.at[slot],
            )

        # Manual DMA fan-out over batch with up to n_inflight copies in flight.
        if B <= 8:
            # Fully static unroll: no traced mod / pl.when needed.
            for b in range(B):
                dma = make_dma(b, b % n_inflight)
                if b >= n_inflight:
                    dma.wait()   # previous DMA on this slot (same transfer size)
                dma.start()
        else:
            @pl.loop(0, B)
            def _(b):
                slot = b % n_inflight
                dma = make_dma(b, slot)

                @pl.when(b >= n_inflight)
                def _wait_prev():
                    dma.wait()   # previous DMA on this slot (same transfer size)

                dma.start()

        # Drain: every slot was used at least once (n_inflight <= B).  Must
        # complete before the next grid step rebuilds the slab.
        for i in range(n_inflight):
            make_dma(0, i).wait()

    return kernel


def position_embedding_learned(x, col_weight, row_weight, *,
                               tile_budget_bytes=8 * 1024 * 1024):
    """x: (B, HW, C). col_weight/row_weight: (256, F). Returns (B, HW, 2F)."""
    B = x.shape[0]
    n_tokens = x.shape[1]
    h = w = int(math.isqrt(n_tokens))
    if h * w != n_tokens:
        raise ValueError("x.shape[1] must be a perfect square")
    if col_weight.shape != row_weight.shape:
        raise ValueError("col/row embedding tables must have the same shape")
    if col_weight.dtype != row_weight.dtype:
        raise ValueError("col/row embedding tables must have the same dtype")
    num_embed, feat = col_weight.shape
    if h > num_embed or w > num_embed:
        raise ValueError(f"h=w={h} exceeds embedding table size {num_embed}")

    dtype = col_weight.dtype
    itemsize = jnp.dtype(dtype).itemsize
    two_f = 2 * feat
    w2f = w * two_f

    # --- tiny lane-dense patterns (layout plumbing; tables sliced to h/w rows)
    # col contribution: lanes [i*2F, i*2F + F) = col_embed[i], rest zero.
    col_pat = jnp.concatenate(
        [col_weight[:w], jnp.zeros((w, feat), dtype)], axis=-1
    ).reshape(1, w2f)                                             # (1, w*2F)
    # row contribution: one lcm(2F,128)-lane period when it divides w*2F (so the
    # in-kernel lane tiling concatenates 128-aligned pieces); otherwise the full
    # width band (kernel does no lane tiling at all).
    period = (two_f * 128) // math.gcd(two_f, 128)                # lcm(2F, 128)
    L = period if (period <= w2f and w2f % period == 0) else w2f
    unit = jnp.concatenate(
        [jnp.zeros((h, feat), dtype), row_weight[:h]], axis=-1)   # (h, 2F)
    row_band = jnp.tile(unit, (1, L // two_f))                    # (h, L)
    lane_reps = w2f // L

    rows = _choose_rows(h, w2f * itemsize, tile_budget_bytes)
    num_row_tiles = h // rows
    n_inflight = max(1, min(4, B))

    # VMEM: one slab + double-buffered tiny inputs + headroom (no 32 MiB floor).
    tile_bytes = rows * w2f * itemsize
    need = tile_bytes + 2 * (w2f + rows * L) * itemsize
    vmem_limit = int(max(need + (4 << 20), 8 << 20))

    kernel = _make_pos_kernel(B, rows, w2f, lane_reps, n_inflight)

    out = pl.pallas_call(
        kernel,
        out_shape=jax.ShapeDtypeStruct((B, h, w2f), dtype),
        grid=(num_row_tiles,),
        in_specs=[
            pl.BlockSpec((1, w2f), lambda r: (0, 0)),        # col pattern (resident)
            pl.BlockSpec((rows, L), lambda r: (r, 0)),       # row pattern tile
        ],
        out_specs=pl.BlockSpec(memory_space=pl.ANY),         # raw HBM, manual DMA
        scratch_shapes=[
            pltpu.VMEM((rows, w2f), dtype),
            pltpu.SemaphoreType.DMA((n_inflight,)),
        ],
        compiler_params=pltpu.CompilerParams(
            dimension_semantics=("parallel",),
            vmem_limit_bytes=vmem_limit,
        ),
        cost_estimate=pl.CostEstimate(
            flops=h * w2f,                                    # one add per slab elem
            transcendentals=0,
            bytes_accessed=(B * h * w2f + h * L + w2f) * itemsize,
        ),
    )(col_pat, row_band)

    # Free contiguous reshape back to the PyTorch layout (B, h*w, 2F).
    return out.reshape(B, h * w, two_f)


def _reference(x, col_weight, row_weight):
    """Pure-JAX reference mirroring the PyTorch forward."""
    B = x.shape[0]
    h = w = int(math.isqrt(x.shape[1]))
    x_emb = col_weight[:w]                                    # (w, F)
    y_emb = row_weight[:h]                                    # (h, F)
    pos = jnp.concatenate(
        [jnp.broadcast_to(x_emb[None, :, :], (h, w, x_emb.shape[-1])),
         jnp.broadcast_to(y_emb[:, None, :], (h, w, y_emb.shape[-1]))],
        axis=-1)                                              # (h, w, 2F)
    pos = jnp.broadcast_to(pos[None], (B, h, w, pos.shape[-1]))
    return pos.reshape(B, h * w, -1)


if __name__ == "__main__":
    key = jax.random.PRNGKey(0)
    k_x, k_row, k_col = jax.random.split(key, 3)

    B, HW, C = 2, 64, 4            # h = w = 8
    num_pos_feats = 32             # output feature dim = 2*32 = 64

    x = jax.random.normal(k_x, (B, HW, C), dtype=jnp.float32)
    # nn.init.uniform_ -> U[0, 1)
    row_weight = jax.random.uniform(k_row, (256, num_pos_feats), dtype=jnp.float32)
    col_weight = jax.random.uniform(k_col, (256, num_pos_feats), dtype=jnp.float32)

    pos = position_embedding_learned(x, col_weight, row_weight)
    pos = jax.block_until_ready(pos)

    expected = _reference(x, col_weight, row_weight)
    assert pos.shape == (B, HW, 2 * num_pos_feats), pos.shape
    assert jnp.allclose(pos, expected), "mismatch vs reference"

    print("KERNEL_OK")
</pallas_src>

<mosaic_0001>
module attributes {stable_mosaic.version = 11 : i64} {
  func.func @kernel(%arg0: i32, %arg1: memref<1x512xf32, #tpu.memory_space<vmem>>, %arg2: memref<8x128xf32, #tpu.memory_space<vmem>>, %arg3: memref<2x8x512xf32, #tpu.memory_space<any>>, %arg4: memref<8x512xf32, #tpu.memory_space<vmem>>, %arg5: memref<2x!tpu.dma_semaphore, #tpu.memory_space<semaphore_mem>>) attributes {dimension_semantics = [#tpu.dimension_semantics<parallel>], iteration_bounds = array<i64: 1>, scalar_prefetch = 0 : i64, scratch_operands = 2 : i64, tpu.core_type = #tpu.core_type<tc>, window_params = [{pipeline_mode = #tpu.pipeline_mode<synchronous>, transform_indices = @transform_0, window_bounds = array<i64: 1, 512>}, {transform_indices = @transform_1, window_bounds = array<i64: 8, 128>}, {}]} {
    %c8_i32 = arith.constant 8 : i32
    %0 = arith.muli %arg0, %c8_i32 : i32
    %1 = tpu.assume_multiple %0, 8 : i32
    %c0 = arith.constant 0 : index
    %c0_0 = arith.constant 0 : index
    %2 = vector.load %arg2[%c0, %c0_0] : memref<8x128xf32, #tpu.memory_space<vmem>>, vector<8x128xf32>
    %3 = tpu.concatenate %2, %2 in 1 : vector<8x128xf32>, vector<8x128xf32> -> vector<8x256xf32>
    %4 = tpu.concatenate %3, %3 in 1 : vector<8x256xf32>, vector<8x256xf32> -> vector<8x512xf32>
    %c0_1 = arith.constant 0 : index
    %c0_2 = arith.constant 0 : index
    %5 = vector.load %arg1[%c0_1, %c0_2] : memref<1x512xf32, #tpu.memory_space<vmem>>, vector<1x512xf32>
    %6 = vector.broadcast %5 : vector<1x512xf32> to vector<8x512xf32>
    %7 = arith.addf %6, %4 : vector<8x512xf32>
    %c0_3 = arith.constant 0 : index
    %c0_4 = arith.constant 0 : index
    %8 = vector.load %arg4[%c0_3, %c0_4] : memref<8x512xf32, #tpu.memory_space<vmem>>, vector<8x512xf32>
    tpu.vector_store %arg4[%c0_3, %c0_4], %7 {strides = array<i32>} : memref<8x512xf32, #tpu.memory_space<vmem>>, vector<8x512xf32>,
    %c0_i32 = arith.constant 0 : i32
    %c0_i32_5 = arith.constant 0 : i32
    %c0_i32_6 = arith.constant 0 : i32
    %9 = tpu.memref_slice %arg3[%c0_i32, %1, %c0_i32_6] : memref<2x8x512xf32, #tpu.memory_space<any>> -> memref<1x8x512xf32, #tpu.memory_space<any>>
    %10 = tpu.memref_squeeze %9 : memref<1x8x512xf32, #tpu.memory_space<any>> -> memref<8x512xf32, #tpu.memory_space<any>>
    %11 = tpu.memref_slice %arg5[%c0_i32_5] : memref<2x!tpu.dma_semaphore, #tpu.memory_space<semaphore_mem>> -> memref<1x!tpu.dma_semaphore, #tpu.memory_space<semaphore_mem>>
    %12 = tpu.memref_squeeze %11 : memref<1x!tpu.dma_semaphore, #tpu.memory_space<semaphore_mem>> -> memref<!tpu.dma_semaphore, #tpu.memory_space<semaphore_mem>>
    tpu.enqueue_dma source(%arg4 : memref<8x512xf32, #tpu.memory_space<vmem>>) target(%10 : memref<8x512xf32, #tpu.memory_space<any>>) target_semaphore(%12 : memref<!tpu.dma_semaphore, #tpu.memory_space<semaphore_mem>>)
    %c1_i32 = arith.constant 1 : i32
    %c1_i32_7 = arith.constant 1 : i32
    %c0_i32_8 = arith.constant 0 : i32
    %13 = tpu.memref_slice %arg3[%c1_i32, %1, %c0_i32_8] : memref<2x8x512xf32, #tpu.memory_space<any>> -> memref<1x8x512xf32, #tpu.memory_space<any>>
    %14 = tpu.memref_squeeze %13 : memref<1x8x512xf32, #tpu.memory_space<any>> -> memref<8x512xf32, #tpu.memory_space<any>>
    %15 = tpu.memref_slice %arg5[%c1_i32_7] : memref<2x!tpu.dma_semaphore, #tpu.memory_space<semaphore_mem>> -> memref<1x!tpu.dma_semaphore, #tpu.memory_space<semaphore_mem>>
    %16 = tpu.memref_squeeze %15 : memref<1x!tpu.dma_semaphore, #tpu.memory_space<semaphore_mem>> -> memref<!tpu.dma_semaphore, #tpu.memory_space<semaphore_mem>>
    tpu.enqueue_dma source(%arg4 : memref<8x512xf32, #tpu.memory_space<vmem>>) target(%14 : memref<8x512xf32, #tpu.memory_space<any>>) target_semaphore(%16 : memref<!tpu.dma_semaphore, #tpu.memory_space<semaphore_mem>>)
    %c0_i32_9 = arith.constant 0 : i32
    %c0_i32_10 = arith.constant 0 : i32
    %c0_i32_11 = arith.constant 0 : i32
    %17 = tpu.memref_slice %arg3[%c0_i32_9, %1, %c0_i32_11] : memref<2x8x512xf32, #tpu.memory_space<any>> -> memref<1x8x512xf32, #tpu.memory_space<any>>
    %18 = tpu.memref_squeeze %17 : memref<1x8x512xf32, #tpu.memory_space<any>> -> memref<8x512xf32, #tpu.memory_space<any>>
    %19 = tpu.memref_slice %arg5[%c0_i32_10] : memref<2x!tpu.dma_semaphore, #tpu.memory_space<semaphore_mem>> -> memref<1x!tpu.dma_semaphore, #tpu.memory_space<semaphore_mem>>
    %20 = tpu.memref_squeeze %19 : memref<1x!tpu.dma_semaphore, #tpu.memory_space<semaphore_mem>> -> memref<!tpu.dma_semaphore, #tpu.memory_space<semaphore_mem>>
    tpu.wait_dma2 semaphore(%20 : memref<!tpu.dma_semaphore, #tpu.memory_space<semaphore_mem>>) src(%arg4 : memref<8x512xf32, #tpu.memory_space<vmem>>) dst(%18 : memref<8x512xf32, #tpu.memory_space<any>>)
    %c0_i32_12 = arith.constant 0 : i32
    %c1_i32_13 = arith.constant 1 : i32
    %c0_i32_14 = arith.constant 0 : i32
    %21 = tpu.memref_slice %arg3[%c0_i32_12, %1, %c0_i32_14] : memref<2x8x512xf32, #tpu.memory_space<any>> -> memref<1x8x512xf32, #tpu.memory_space<any>>
    %22 = tpu.memref_squeeze %21 : memref<1x8x512xf32, #tpu.memory_space<any>> -> memref<8x512xf32, #tpu.memory_space<any>>
    %23 = tpu.memref_slice %arg5[%c1_i32_13] : memref<2x!tpu.dma_semaphore, #tpu.memory_space<semaphore_mem>> -> memref<1x!tpu.dma_semaphore, #tpu.memory_space<semaphore_mem>>
    %24 = tpu.memref_squeeze %23 : memref<1x!tpu.dma_semaphore, #tpu.memory_space<semaphore_mem>> -> memref<!tpu.dma_semaphore, #tpu.memory_space<semaphore_mem>>
    tpu.wait_dma2 semaphore(%24 : memref<!tpu.dma_semaphore, #tpu.memory_space<semaphore_mem>>) src(%arg4 : memref<8x512xf32, #tpu.memory_space<vmem>>) dst(%22 : memref<8x512xf32, #tpu.memory_space<any>>)
    return
  }
  func.func @transform_0(%arg0: i32) -> (i32, i32) {
    %c0_i32 = arith.constant 0 : i32
    %c0_i32_0 = arith.constant 0 : i32
    %c0_i32_1 = arith.constant 0 : i32
    return %c0_i32, %c0_i32_0 : i32, i32
  }
  func.func @transform_1(%arg0: i32) -> (i32, i32) {
    %c0_i32 = arith.constant 0 : i32
    %c0_i32_0 = arith.constant 0 : i32
    return %arg0, %c0_i32 : i32, i32
  }
}

</mosaic_0001>

<bundles_post_ra>
// kernel: tpu_custom_call.1
= control target key start
LH: loop header
LB: loop body
LE: loop exit
PB: predicated region body
PF: predicated region fallthrough
CT: control target
= control target key end

     0   :  { %7 = vsyncpa [#allocation5], 0  ;;  %s251_s0 = inlined_call_operand.hbm [shape: f32[1,512], index: 0, kind: input, shape index: {}]   ;;  %s252_s1 = inlined_call_operand.hbm [shape: f32[8,128], index: 1, kind: input, shape index: {}]   ;;  %s253_s2 = inlined_call_operand.hbm [shape: f32[2,8,512], index: 2, kind: output, shape index: {}]  }
   0x1   :  { %8 = vsyncpa [#allocation7], 0  ;;  %s221_s9 = smov [#allocation4]   ;;  %s222_s11 = smov [#allocation6]  }
   0x2   :  { %s15_s10 = sshll.u32 %s221_s9, 4  ;;  %s25_s12 = sshll.u32 %s222_s11, 4  ;;  %s16_s10 = int_to_ptr.vmem [resolvable:$true] %s15_s10  ;;  %s26_s12 = int_to_ptr.vmem [resolvable:$true] %s25_s12 }
   0x3   :  { %s138_s13 = scalar_lea.vmem %s16_s10, 64  ;;  %p143_p1 = scmp.lt.s32.totalorder %s16_s10, %s16_s10 }
   0x4   :  { %p139_p0 = scmp.ne.s32.totalorder %s16_s10, %s138_s13  ;;  %p144_p2 = scmp.lt.s32.totalorder %s138_s13, %s138_s13 }
   0x6   :  { %p145_p3 = por %p144_p2, %p143_p1 }
   0x8   :  { %p146_p4 = pnand %p145_p3, %p139_p0 }
   0xa   :  { %149 = shalt.err (!%p146_p4)
}
   0xb   :  { %18 = dma.hbm_to_vmem [thread:$0]  %s251_s0, 64, %s16_s10, [#allocation5]  }
   0xc   :  { %s158_s16 = scalar_lea.vmem %s26_s12, 128  ;;  %p163_p6 = scmp.lt.s32.totalorder %s26_s12, %s26_s12 }
   0xd   :  { %p159_p5 = scmp.ne.s32.totalorder %s26_s12, %s158_s16  ;;  %p164_p7 = scmp.lt.s32.totalorder %s158_s16, %s158_s16 }
   0xf   :  { %p165_p8 = por %p164_p7, %p163_p6 }
  0x11   :  { %p166_p9 = pnand %p165_p8, %p159_p5 }
  0x13   :  { %169 = shalt.err (!%p166_p9)
}
  0x14   :  { %28 = dma.hbm_to_vmem [thread:$0]  %s252_s1, 128, %s26_s12, [#allocation7]  }
  0x15   :  { %213 = dma.done.wait [#allocation5], 64  }
  0x16   :  { %214 = vsyncadd [#allocation5], 4294967232 }
  0x17   :  { %215 = dma.done.wait [#allocation7], 128  }
  0x18   :  { %216 = vsyncadd [#allocation7], 4294967168  ;;  %v39_v0 = vlaneseq  ;;  %v36_v6 = vld [vmem:[#allocation6] sm:$0xff]  ;;  %v37_v7 = vld [vmem:[#allocation4] sm:$0xf]  ;;  %s223_s0 = smov [#allocation2]  }
  0x19   :  { %s79_s19 = sshll.u32 %s223_s0, 4  ;;  %s124_s21 = scalar_lea.hbm %s253_s2, 512  ;;  %s80_s19 = int_to_ptr.vmem [resolvable:$true] %s79_s19 }
  0x1a   :  { %v40_v1 = vshrl.u32 %v39_v0, 7  ;;  %s170_s22 = scalar_lea.vmem %s80_s19, 512  ;;  %p175_p11 = scmp.lt.s32.totalorder %s80_s19, %s80_s19 }
  0x1b   :  { %p171_p10 = scmp.ne.s32.totalorder %s80_s19, %s170_s22  ;;  %p176_p12 = scmp.lt.s32.totalorder %s170_s22, %s170_s22 }
  0x1c   :  { %v41_v2 = vsub.s32 0, %v40_v1  ;;  %v45_v3 = vsub.s32 1, %v40_v1  ;;  %v49_v4 = vsub.s32 2, %v40_v1  ;;  %v53_v5 = vsub.s32 3, %v40_v1 }
  0x1d   :  { %p177_p13 = por %p176_p12, %p175_p11 }
  0x1e   :  { %v42_v8 = vrot.slane %v37_v7, %v41_v2  ;;  %v46_v9 = vrot.slane %v37_v7, %v45_v3  ;;  %v50_v10 = vrot.slane %v37_v7, %v49_v4  ;;  %v54_v11 = vrot.slane %v37_v7, %v53_v5 }
  0x1f   :  { %p178_p0 = pnand %p177_p13, %p171_p10 }
  0x20   :  { %v59_v12 = vadd.f32 %v42_v8, %v36_v6  ;;  %v60_v13 = vadd.f32 %v46_v9, %v36_v6  ;;  %v61_v14 = vadd.f32 %v50_v10, %v36_v6  ;;  %v62_v15 = vadd.f32 %v54_v11, %v36_v6 }
  0x22   :  { %63 = vst [vmem:[#allocation2] sm:$0xff] %v59_v12  ;;  %64 = vst [vmem:[#allocation2 + $0x8] sm:$0xff] %v60_v13 }
  0x23   :  { %65 = vst [vmem:[#allocation2 + $0x10] sm:$0xff] %v61_v14  ;;  %66 = vst [vmem:[#allocation2 + $0x18] sm:$0xff] %v62_v15 }
  0x24   :  { %181 = shalt.err (!%p178_p0)  }
  0x25   :  { %82 = dma.vmem_to_hbm [thread:$0]  %s80_s19, 512, %s253_s2, [#allocation3] }
  0x26   :  { %201 = shalt.err (!%p178_p0)  }
  0x27   :  { %97 = dma.vmem_to_hbm [thread:$0]  %s80_s19, 512, %s124_s21, [#allocation3 + $0x1] }
  0x28   :  { %217 = dma.done.wait [#allocation3], 512 }
  0x29   :  { %218 = vsyncadd [#allocation3], 4294966784 }
  0x2a   :  { %219 = dma.done.wait [#allocation3 + $0x1], 512 }
  0x2b   :  { %220 = vsyncadd [#allocation3 + $0x1], 4294966784 }
  0x2c   :  { %104 = vsyncpa [#allocation5], 1 }
  0x2d   :  { %105 = vsyncpa [#allocation7], 1 }
  0x2e   :  { %106 = vsyncmov [#allocation3] }
  0x31   :  { %s107_s25 = vpop.sfrf %106 }
  0x32   :  { %p125_p1 = scmp.ne.s32.totalorder %s107_s25, 0 }
  0x34   :  { %111 = shalt.err (%p125_p1)  }
  0x35   :  { %113 = vsyncmov [#allocation3 + $0x1] }
  0x38   :  { %s114_s26 = vpop.sfrf %113 }
  0x39   :  { %p126_p2 = scmp.ne.s32.totalorder %s114_s26, 0 }
  0x3b   :  { %118 = shalt.err (%p126_p2)  }

</bundles_post_ra>
